<compile_context>
chip_gen: v7x
topology: tpu7x:2x2x1
jax: 0.10.0
libtpu: 0.0.40
codegen_flags: <defaults>
</compile_context>

<pallas_src>
import jax
import jax.numpy as jnp
from jax.experimental import pallas as pl
from jax.experimental.pallas import tpu as pltpu

# Small, module-consistent synthetic shapes.
N, CIN, H, W = 2, 4, 16, 16          # batch, in-channels, spatial
COUT = 32                            # backbone feature width
NUM_CLASSES = 88                     # matches num_classes=88 in the module
C_PAD = 128                          # lane-dense padded class dim
KH = KW = 3                          # 3x3 conv
K = KH * KW * CIN                    # im2col contraction dim (36)
K_PAD = 48                           # padded contraction dim (sublane friendly)
HW = H * W
M = N * HW                           # rows of the conv-as-matmul (512)


def _network_kernel(patches_ref, wc_ref, bc_ref, pool_ref, wh_ref, bh_ref,
                    out_ref):
    # --- conv3x3 'same' as a single im2col matmul (MXU, f32 accumulation) ---
    acc = jnp.dot(patches_ref[...], wc_ref[...],
                  preferred_element_type=jnp.float32)          # [M, COUT] f32
    feat = jnp.maximum(acc + bc_ref[...], 0.0)                 # f32 bias + ReLU (VPU)

    # --- global average pool as a matmul with the precomputed pool matrix ---
    pooled = jnp.dot(pool_ref[...], feat.astype(jnp.bfloat16),
                     preferred_element_type=jnp.float32)       # [N, COUT] f32

    # --- classification head (MXU), lane-dense padded-to-128 output ---
    logits = jnp.dot(pooled.astype(jnp.bfloat16), wh_ref[...],
                     preferred_element_type=jnp.float32) + bh_ref[...]
    out_ref[...] = logits                                      # [N, C_PAD] f32


def prepare_params(wconv, bconv, whead, bhead):
    """One-time parameter preprocessing (hoisted out of the per-call path)."""
    # conv weights: [KH, KW, CIN, COUT] -> [K, COUT] -> pad K to K_PAD, bf16.
    wc = wconv.reshape(K, COUT)
    wc = jnp.pad(wc, ((0, K_PAD - K), (0, 0))).astype(jnp.bfloat16)
    bc = bconv.reshape(1, COUT).astype(jnp.float32)
    # head: pad classes to lane-dense 128, bf16 weights / f32 bias.
    wh = jnp.pad(whead, ((0, 0), (0, C_PAD - NUM_CLASSES))).astype(jnp.bfloat16)
    bh = jnp.pad(bhead, (0, C_PAD - NUM_CLASSES)).reshape(1, C_PAD).astype(jnp.float32)
    # block-diagonal global-average-pool matrix (compile-time constant).
    row = jax.lax.broadcasted_iota(jnp.int32, (N, M), 0)
    col = jax.lax.broadcasted_iota(jnp.int32, (N, M), 1) // HW
    pool = jnp.where(row == col, 1.0 / HW, 0.0).astype(jnp.bfloat16)
    return wc, bc, pool, wh, bh


@jax.jit
def network_forward(x_nchw, wc, bc, pool, wh, bh):
    """x_nchw: [N, CIN, H, W] float32 -> [N, NUM_CLASSES] float32 logits."""
    # NCHW -> NHWC, 'same' pad, wrapper-side im2col (tap order matches wc:
    # (kh, kw, cin) fastest-to-slowest in the last axis).
    x = jnp.transpose(x_nchw, (0, 2, 3, 1))
    xp = jnp.pad(x, ((0, 0), (1, 1), (1, 1), (0, 0)))
    taps = [xp[:, kh:kh + H, kw:kw + W, :]
            for kh in range(KH) for kw in range(KW)]
    patches = jnp.concatenate(taps, axis=-1).reshape(M, K)        # [M, 36]
    patches = jnp.pad(patches, ((0, 0), (0, K_PAD - K))).astype(jnp.bfloat16)

    vmem = pl.BlockSpec(memory_space=pltpu.MemorySpace.VMEM)
    out_padded = pl.pallas_call(
        _network_kernel,
        out_shape=jax.ShapeDtypeStruct((N, C_PAD), jnp.float32),
        in_specs=[vmem, vmem, vmem, vmem, vmem, vmem],
        out_specs=vmem,
    )(patches, wc, bc, pool, wh, bh)
    return out_padded[:, :NUM_CLASSES]


if __name__ == "__main__":
    key = jax.random.PRNGKey(0)
    k1, k2, k3, k4, k5 = jax.random.split(key, 5)

    # deterministic synthetic input + parameters (no checkpoint loading)
    x = jax.random.normal(k1, (N, CIN, H, W), jnp.float32)
    wconv = jax.random.normal(k2, (KH, KW, CIN, COUT), jnp.float32) * 0.1
    bconv = jax.random.normal(k3, (COUT,), jnp.float32) * 0.01
    whead = jax.random.normal(k4, (COUT, NUM_CLASSES), jnp.float32) * 0.1
    bhead = jax.random.normal(k5, (NUM_CLASSES,), jnp.float32) * 0.01

    # one-time preprocessing (not part of the per-call path)
    params = prepare_params(wconv, bconv, whead, bhead)
    params = jax.block_until_ready(params)

    out = network_forward(x, *params)
    out = jax.block_until_ready(out)
    assert out.shape == (N, NUM_CLASSES) and out.dtype == jnp.float32
    print("KERNEL_OK")
</pallas_src>

<mosaic_0001>
module attributes {stable_mosaic.version = 11 : i64} {
  func.func @_network_kernel(%arg0: memref<512x48xbf16, #tpu.memory_space<vmem>>, %arg1: memref<48x32xbf16, #tpu.memory_space<vmem>>, %arg2: memref<1x32xf32, #tpu.memory_space<vmem>>, %arg3: memref<2x512xbf16, #tpu.memory_space<vmem>>, %arg4: memref<32x128xbf16, #tpu.memory_space<vmem>>, %arg5: memref<1x128xf32, #tpu.memory_space<vmem>>, %arg6: memref<2x128xf32, #tpu.memory_space<vmem>>) attributes {dimension_semantics = [], scalar_prefetch = 0 : i64, scratch_operands = 0 : i64, tpu.core_type = #tpu.core_type<tc>} {
    %c0 = arith.constant 0 : index
    %c0_0 = arith.constant 0 : index
    %0 = vector.load %arg0[%c0, %c0_0] : memref<512x48xbf16, #tpu.memory_space<vmem>>, vector<512x48xbf16>
    %c0_1 = arith.constant 0 : index
    %c0_2 = arith.constant 0 : index
    %1 = vector.load %arg1[%c0_1, %c0_2] : memref<48x32xbf16, #tpu.memory_space<vmem>>, vector<48x32xbf16>
    %cst = arith.constant dense<0.000000e+00> : vector<512x32xf32>
    %2 = tpu.matmul %0, %1, %cst {dimension_numbers = #tpu.dot_dimension_numbers<[1], [0], [0], [1], [0, 0, 1, 1], [], []>} : vector<512x48xbf16>, vector<48x32xbf16>, vector<512x32xf32> -> vector<512x32xf32>
    %c0_3 = arith.constant 0 : index
    %c0_4 = arith.constant 0 : index
    %3 = vector.load %arg2[%c0_3, %c0_4] : memref<1x32xf32, #tpu.memory_space<vmem>>, vector<1x32xf32>
    %4 = vector.broadcast %3 : vector<1x32xf32> to vector<512x32xf32>
    %5 = arith.addf %2, %4 : vector<512x32xf32>
    %cst_5 = arith.constant 0.000000e+00 : f32
    %6 = vector.broadcast %cst_5 : f32 to vector<512x32xf32>
    %7 = arith.maximumf %5, %6 : vector<512x32xf32>
    %c0_6 = arith.constant 0 : index
    %c0_7 = arith.constant 0 : index
    %8 = vector.load %arg3[%c0_6, %c0_7] : memref<2x512xbf16, #tpu.memory_space<vmem>>, vector<2x512xbf16>
    %9 = arith.truncf %7 : vector<512x32xf32> to vector<512x32xbf16>
    %cst_8 = arith.constant dense<0.000000e+00> : vector<2x32xf32>
    %10 = tpu.matmul %8, %9, %cst_8 {dimension_numbers = #tpu.dot_dimension_numbers<[1], [0], [0], [1], [0, 0, 1, 1], [], []>} : vector<2x512xbf16>, vector<512x32xbf16>, vector<2x32xf32> -> vector<2x32xf32>
    %11 = arith.truncf %10 : vector<2x32xf32> to vector<2x32xbf16>
    %c0_9 = arith.constant 0 : index
    %c0_10 = arith.constant 0 : index
    %12 = vector.load %arg4[%c0_9, %c0_10] : memref<32x128xbf16, #tpu.memory_space<vmem>>, vector<32x128xbf16>
    %cst_11 = arith.constant dense<0.000000e+00> : vector<2x128xf32>
    %13 = tpu.matmul %11, %12, %cst_11 {dimension_numbers = #tpu.dot_dimension_numbers<[1], [0], [0], [1], [0, 0, 1, 1], [], []>} : vector<2x32xbf16>, vector<32x128xbf16>, vector<2x128xf32> -> vector<2x128xf32>
    %c0_12 = arith.constant 0 : index
    %c0_13 = arith.constant 0 : index
    %14 = vector.load %arg5[%c0_12, %c0_13] : memref<1x128xf32, #tpu.memory_space<vmem>>, vector<1x128xf32>
    %15 = vector.broadcast %14 : vector<1x128xf32> to vector<2x128xf32>
    %16 = arith.addf %13, %15 : vector<2x128xf32>
    %c0_14 = arith.constant 0 : index
    %c0_15 = arith.constant 0 : index
    %17 = vector.load %arg6[%c0_14, %c0_15] : memref<2x128xf32, #tpu.memory_space<vmem>>, vector<2x128xf32>
    tpu.vector_store %arg6[%c0_14, %c0_15], %16 {strides = array<i32>} : memref<2x128xf32, #tpu.memory_space<vmem>>, vector<2x128xf32>,
    return
  }
}

</mosaic_0001>

<bundles_post_ra>
// kernel: network_forward.1
= control target key start
LH: loop header
LB: loop body
LE: loop exit
PB: predicated region body
PF: predicated region fallthrough
CT: control target
= control target key end

     0   :  { %vm280_vm0 = vcmask 392192   ;;  %s1592_s0 = inlined_call_operand.vmem [shape: bf16[512,48], index: 0, kind: input, shape index: {}]   ;;  %s1593_s1 = inlined_call_operand.vmem [shape: bf16[48,32], index: 1, kind: input, shape index: {}]   ;;  %s1594_s2 = inlined_call_operand.vmem [shape: f32[1,32], index: 2, kind: input, shape index: {}]   ;;  %s1595_s3 = inlined_call_operand.vmem [shape: bf16[2,512], index: 3, kind: input, shape index: {}]   ;;  %s1596_s4 = inlined_call_operand.vmem [shape: bf16[32,128], index: 4, kind: input, shape index: {}]   ;;  %s1597_s5 = inlined_call_operand.vmem [shape: f32[1,128], index: 5, kind: input, shape index: {}]   ;;  %s1598_s6 = inlined_call_operand.hbm [shape: f32[2,128], index: 6, kind: output, shape index: {}]  }
   0x1   :  { %v1198_v0 = vld [vmem:[%s1593_s1] sm:$0xff]   ;;  %v1199_v1 = vld [vmem:[%s1593_s1 + $0x8] sm:$0xff]   ;;  %v1200_v3 = vld [vmem:[%s1593_s1 + $0x10] sm:$0xff]  }
   0x2   :  { %1110 = vmatprep.subr.bf16.mxu0 %v1198_v0  ;;  %1188 = vmatprep.subr.bf16.mxu1 %v1198_v0  ;;  %v1201_v2 = vld [vmem:[%s1592_s0] sm:$0xff]   ;;  %v1202_v4 = vld [vmem:[%s1592_s0 + $0x8] sm:$0xff]   ;;  %v1203_v5 = vld [vmem:[%s1592_s0 + $0x10] sm:$0xff]  }
   0x3   :  { %1111 = vmatpush3.bf16.msra.mxu0 %v1198_v0  ;;  %1191 = vmatpush3.bf16.msra.mxu1 %v1198_v0  ;;  %v1204_v6 = vld [vmem:[%s1592_s0 + $0x18] sm:$0xff]   ;;  %v1216_v7 = vld [vmem:[%s1592_s0 + $0xb0] sm:$0xff]   ;;  %v1205_v8 = vld [vmem:[%s1592_s0 + $0x20] sm:$0xff]  }
   0x4   :  { %1112 = vmatprep.subr.bf16.mxu0 %v1199_v1  ;;  %1189 = vmatprep.subr.bf16.mxu1 %v1199_v1  ;;  %v1218_v9 = vld [vmem:[%s1592_s0 + $0xb8] sm:$0xff]   ;;  %v1219_v10 = vld [vmem:[%s1592_s0 + $0xc0] sm:$0xff]   ;;  %v1206_v11 = vld [vmem:[%s1592_s0 + $0x28] sm:$0xff]  }
   0x5   :  { %1116 = vmatprep.mubr.msk.bf16.mxu0 %vm280_vm0, %v1201_v2  ;;  %1160 = vmatprep.mubr.msk.bf16.mxu1 %vm280_vm0, %v1216_v7  ;;  %v1207_v12 = vld [vmem:[%s1592_s0 + $0x30] sm:$0xff]   ;;  %v1221_v13 = vld [vmem:[%s1592_s0 + $0xc8] sm:$0xff]   ;;  %v1208_v15 = vld [vmem:[%s1592_s0 + $0x38] sm:$0xff]  }
   0x6   :  { %v1223_v14 = vld [vmem:[%s1592_s0 + $0xd0] sm:$0xff]   ;;  %v1209_v16 = vld [vmem:[%s1592_s0 + $0x40] sm:$0xff]   ;;  %v1225_v17 = vld [vmem:[%s1592_s0 + $0xd8] sm:$0xff]  }
   0x7   :  { %1113 = vmatpush3.bf16.msra.mxu0 %v1199_v1  ;;  %1192 = vmatpush3.bf16.msra.mxu1 %v1199_v1  ;;  %v1227_v18 = vld [vmem:[%s1592_s0 + $0xe0] sm:$0xff]  }
   0x8   :  { %1114 = vmatprep.subr.bf16.mxu0 %v1200_v3  ;;  %1190 = vmatprep.subr.bf16.mxu1 %v1200_v3 }
   0xb   :  { %1115 = vmatpush3.bf16.msra.mxu0 %v1200_v3  ;;  %1193 = vmatpush3.bf16.msra.mxu1 %v1200_v3 }
   0xe   :  { %1117 = vmatmul.mubr.msk.bf16.vlgmr.msra.gmra.mrb[0].mxu0 %vm280_vm0, %v1202_v4  ;;  %1161 = vmatmul.mubr.msk.bf16.vlgmr.msra.gmra.mrb[0].mxu1 %vm280_vm0, %v1218_v9 }
   0xf   :  { %1120 = vmatprep.mubr.msk.bf16.mxu0 %vm280_vm0, %v1203_v5  ;;  %1164 = vmatprep.mubr.msk.bf16.mxu1 %vm280_vm0, %v1219_v10 }
  0x16   :  { %1121 = vmatmul.mubr.msk.bf16.gmra.mrb[4].mxu0 %vm280_vm0, %v1204_v6  ;;  %1165 = vmatmul.mubr.msk.bf16.gmra.mrb[4].mxu1 %vm280_vm0, %v1221_v13 }
  0x17   :  { %1124 = vmatprep.mubr.msk.bf16.mxu0 %vm280_vm0, %v1205_v8  ;;  %1168 = vmatprep.mubr.msk.bf16.mxu1 %vm280_vm0, %v1223_v14 }
  0x1e   :  { %1125 = vmatmul.mubr.msk.bf16.gmra.mrb[8].mxu0 %vm280_vm0, %v1206_v11 }
  0x1f   :  { %1128 = vmatprep.mubr.msk.bf16.mxu0 %vm280_vm0, %v1207_v12 }
  0x20   :  { %11 = vsyncpa [#allocation3], 0  ;;  %1169 = vmatmul.mubr.msk.bf16.gmra.mrb[8].mxu1 %vm280_vm0, %v1225_v17  ;;  %v1210_v19 = vld [vmem:[%s1592_s0 + $0x48] sm:$0xff]   ;;  %v1211_v21 = vld [vmem:[%s1592_s0 + $0x50] sm:$0xff]   ;;  %v1259_v35 = vmov 1966171168   ;;  %v775_v37 = vlaneseq }
  0x21   :  { %1172 = vmatprep.mubr.msk.bf16.mxu1 %vm280_vm0, %v1227_v18  ;;  %v1229_v20 = vld [vmem:[%s1592_s0 + $0xe8] sm:$0xff]   ;;  %v1231_v22 = vld [vmem:[%s1592_s0 + $0xf0] sm:$0xff]   ;;  %v1212_v23 = vld [vmem:[%s1592_s0 + $0x58] sm:$0xff]   ;;  %v773_v36 = vunpack.c.l.s4 %v1259_v35  ;;  %vm1261_vm1 = vmmov 0   ;;  %vm896_vm2 = vcmask 261120  }
  0x22   :  { %v1232_v24 = vld [vmem:[%s1592_s0 + $0xf8] sm:$0xff]   ;;  %v1213_v25 = vld [vmem:[%s1592_s0 + $0x60] sm:$0xff]   ;;  %v1214_v26 = vld [vmem:[%s1592_s0 + $0x68] sm:$0xff]   ;;  %v776_v39 = vshrl.u32 %v775_v37, 7 }
  0x23   :  { %v1215_v27 = vld [vmem:[%s1592_s0 + $0x70] sm:$0xff]   ;;  %v1217_v28 = vld [vmem:[%s1592_s0 + $0x78] sm:$0xff]   ;;  %v1220_v29 = vld [vmem:[%s1592_s0 + $0x80] sm:$0xff]   ;;  %v774_v38 = vunpack.c.0.s8 %v773_v36 }
  0x24   :  { %v1222_v30 = vld [vmem:[%s1592_s0 + $0x88] sm:$0xff]   ;;  %v1224_v31 = vld [vmem:[%s1592_s0 + $0x90] sm:$0xff]   ;;  %v1226_v32 = vld [vmem:[%s1592_s0 + $0x98] sm:$0xff]  }
  0x25   :  { %v1228_v33 = vld [vmem:[%s1592_s0 + $0xa0] sm:$0xff]   ;;  %v1230_v34 = vld [vmem:[%s1592_s0 + $0xa8] sm:$0xff]   ;;  %v777_v42 = vsub.s32 %v774_v38, %v776_v39 }
  0x26   :  { %1129 = vmatmul.mubr.msk.bf16.gmra.mrb[12].mxu0 %vm280_vm0, %v1208_v15  ;;  %v1023_v40 = vld.sshfl [vmem:[%s1595_s3] sm:$0x33 pattern:$0x75316420] }
  0x27   :  { %1132 = vmatprep.mubr.msk.bf16.mxu0 %vm280_vm0, %v1209_v16  ;;  %v771_v41 = vcombine.high %v1023_v40, %v1023_v40  ;;  %v1440_v44 = vrot.slane %v1023_v40, %v777_v42  ;;  %v1446_v45 = vld [vmem:[%s1594_s2] ss:$0 sm:$0xff] }
  0x28   :  { %1173 = vmatmul.mubr.msk.bf16.gmra.mrb[12].mxu1 %vm280_vm0, %v1229_v20 }
  0x29   :  { %1176 = vmatprep.mubr.msk.bf16.mxu1 %vm280_vm0, %v1231_v22  ;;  %v1438_v43 = vrot.slane %v771_v41, %v777_v42 }
  0x2e   :  { %1133 = vmatmul.mubr.msk.bf16.gmra.mrb[16].mxu0 %vm280_vm0, %v1210_v19 }
  0x2f   :  { %1136 = vmatprep.mubr.msk.bf16.mxu0 %vm280_vm0, %v1211_v21 }
  0x30   :  { %1177 = vmatmul.mubr.msk.bf16.gmra.mrb[16].mxu1 %vm280_vm0, %v1232_v24 }
  0x31   :  { %824 = vmatprep.mubr.bf16.mxu1 %v1438_v43 }
  0x36   :  { %1137 = vmatmul.mubr.msk.bf16.gmra.mrb[20].mxu0 %vm280_vm0, %v1212_v23 }
  0x37   :  { %1140 = vmatprep.mubr.msk.bf16.mxu0 %vm280_vm0, %v1213_v25 }
  0x3e   :  { %1141 = vmatmul.mubr.msk.bf16.gmra.mrb[24].mxu0 %vm280_vm0, %v1214_v26 }
  0x3f   :  { %1144 = vmatprep.mubr.msk.bf16.mxu0 %vm280_vm0, %v1215_v27 }
  0x46   :  { %1145 = vmatmul.mubr.msk.bf16.gmra.mrb[28].mxu0 %vm280_vm0, %v1217_v28 }
  0x47   :  { %1148 = vmatprep.mubr.msk.bf16.mxu0 %vm280_vm0, %v1220_v29 }
  0x4e   :  { %1149 = vmatmul.mubr.msk.bf16.gmra.mrb[32].mxu0 %vm280_vm0, %v1222_v30 }
  0x4f   :  { %1152 = vmatprep.mubr.msk.bf16.mxu0 %vm280_vm0, %v1224_v31 }
  0x56   :  { %1153 = vmatmul.mubr.msk.bf16.gmra.mrb[36].mxu0 %vm280_vm0, %v1226_v32 }
  0x57   :  { %1156 = vmatprep.mubr.msk.bf16.mxu0 %vm280_vm0, %v1228_v33 }
  0x5e   :  { %1157 = vmatmul.mubr.msk.bf16.gmra.mrb[40].mxu0 %vm280_vm0, %v1230_v34 }
  0xe1   :  { %v1118_v46 = vpop.f32.mrb[0].mxu0  ;;  %v1162_v61 = vpop.f32.mrb[0].mxu1 }
  0xe2   :  { %v420_v47 = vadd.f32 %v1118_v46, %v1446_v45  ;;  %v411_v48 = vpop.f32.mrb[1].mxu0  ;;  %v596_v0 = vadd.f32 %v1162_v61, %v1446_v45  ;;  %v587_v1 = vpop.f32.mrb[1].mxu1 }
  0xe3   :  { %v412_v49 = vadd.f32 %v1446_v45, %v411_v48  ;;  %v1119_v50 = vpop.f32.mrb[2].mxu0  ;;  %v588_v4 = vadd.f32 %v1446_v45, %v587_v1  ;;  %v1163_v5 = vpop.f32.mrb[2].mxu1 }
  0xe4   :  { %v423_v51 = vadd.f32 %v1119_v50, %v1446_v45  ;;  %v414_v52 = vpop.f32.mrb[3].mxu0  ;;  %v668_v54 = vmax.f32 %v420_v47, 0.0  ;;  %v712_v8 = vmax.f32 %v596_v0, 0.0  ;;  %v599_v9 = vadd.f32 %v1163_v5, %v1446_v45  ;;  %v590_v10 = vpop.f32.mrb[3].mxu1 }
  0xe5   :  { %v415_v53 = vadd.f32 %v1446_v45, %v414_v52  ;;  %v666_v56 = vmax.f32 %v412_v49, 0.0  ;;  %v710_v12 = vmax.f32 %v588_v4, 0.0  ;;  %v591_v13 = vadd.f32 %v1446_v45, %v590_v10 }
  0xe6   :  { %v669_v55 = vmax.f32 %v423_v51, 0.0  ;;  %v713_v16 = vmax.f32 %v599_v9, 0.0 }
  0xe7   :  { %v667_v57 = vmax.f32 %v415_v53, 0.0  ;;  %v711_v19 = vmax.f32 %v591_v13, 0.0 }
  0xe8   :  { %v1452_v58 = vpack.c.bf16 %v669_v55, %v668_v54  ;;  %v1466_v21 = vpack.c.bf16 %v713_v16, %v712_v8 }
  0xe9   :  { %v1454_v59 = vpack.c.bf16 %v667_v57, %v666_v56  ;;  %v1122_v60 = vpop.f32.mrb[4].mxu0  ;;  %v1470_v24 = vpack.c.bf16 %v711_v19, %v710_v12  ;;  %v1166_v25 = vpop.f32.mrb[4].mxu1 }
  0xea   :  { %v436_v62 = vadd.f32 %v1122_v60, %v1446_v45  ;;  %v427_v63 = vpop.f32.mrb[5].mxu0  ;;  %v612_v28 = vadd.f32 %v1166_v25, %v1446_v45  ;;  %v603_v29 = vpop.f32.mrb[5].mxu1 }
  0xeb   :  { %v428_v2 = vadd.f32 %v1446_v45, %v427_v63  ;;  %v1123_v3 = vpop.f32.mrb[6].mxu0  ;;  %v604_v32 = vadd.f32 %v1446_v45, %v603_v29  ;;  %v1167_v33 = vpop.f32.mrb[6].mxu1 }
  0xec   :  { %v439_v6 = vadd.f32 %v1123_v3, %v1446_v45  ;;  %v430_v7 = vpop.f32.mrb[7].mxu0  ;;  %v672_v14 = vmax.f32 %v436_v62, 0.0  ;;  %v716_v36 = vmax.f32 %v612_v28, 0.0  ;;  %v615_v37 = vadd.f32 %v1167_v33, %v1446_v45  ;;  %v606_v38 = vpop.f32.mrb[7].mxu1 }
  0xed   :  { %v431_v11 = vadd.f32 %v1446_v45, %v430_v7  ;;  %v670_v17 = vmax.f32 %v428_v2, 0.0  ;;  %v714_v40 = vmax.f32 %v604_v32, 0.0  ;;  %v607_v41 = vadd.f32 %v1446_v45, %v606_v38 }
  0xee   :  { %v673_v15 = vmax.f32 %v439_v6, 0.0  ;;  %v717_v47 = vmax.f32 %v615_v37, 0.0 }
  0xef   :  { %v671_v18 = vmax.f32 %v431_v11, 0.0  ;;  %v715_v50 = vmax.f32 %v607_v41, 0.0 }
  0xf0   :  { %v1464_v20 = vpack.c.bf16 %v673_v15, %v672_v14  ;;  %v1482_v52 = vpack.c.bf16 %v717_v47, %v716_v36 }
  0xf1   :  { %v1468_v22 = vpack.c.bf16 %v671_v18, %v670_v17  ;;  %v1126_v23 = vpop.f32.mrb[8].mxu0  ;;  %v1486_v55 = vpack.c.bf16 %v715_v50, %v714_v40 }
  0xf2   :  { %v452_v26 = vadd.f32 %v1126_v23, %v1446_v45  ;;  %v443_v27 = vpop.f32.mrb[9].mxu0 }
  0xf3   :  { %v444_v30 = vadd.f32 %v1446_v45, %v443_v27  ;;  %v1127_v31 = vpop.f32.mrb[10].mxu0  ;;  %v1170_v56 = vpop.f32.mrb[8].mxu1 }
  0xf4   :  { %v455_v34 = vadd.f32 %v1127_v31, %v1446_v45  ;;  %v446_v35 = vpop.f32.mrb[11].mxu0  ;;  %v676_v42 = vmax.f32 %v452_v26, 0.0  ;;  %v628_v61 = vadd.f32 %v1170_v56, %v1446_v45  ;;  %v619_v62 = vpop.f32.mrb[9].mxu1 }
  0xf5   :  { %v447_v39 = vadd.f32 %v1446_v45, %v446_v35  ;;  %v674_v48 = vmax.f32 %v444_v30, 0.0  ;;  %v620_v1 = vadd.f32 %v1446_v45, %v619_v62  ;;  %v1171_v2 = vpop.f32.mrb[10].mxu1 }
  0xf6   :  { %v677_v46 = vmax.f32 %v455_v34, 0.0  ;;  %v720_v5 = vmax.f32 %v628_v61, 0.0  ;;  %v631_v6 = vadd.f32 %v1171_v2, %v1446_v45  ;;  %v622_v7 = vpop.f32.mrb[11].mxu1 }
  0xf7   :  { %v675_v49 = vmax.f32 %v447_v39, 0.0  ;;  %v718_v9 = vmax.f32 %v620_v1, 0.0  ;;  %v623_v10 = vadd.f32 %v1446_v45, %v622_v7 }
  0xf8   :  { %v1480_v51 = vpack.c.bf16 %v677_v46, %v676_v42  ;;  %v721_v13 = vmax.f32 %v631_v6, 0.0 }
  0xf9   :  { %v1484_v53 = vpack.c.bf16 %v675_v49, %v674_v48  ;;  %v1130_v54 = vpop.f32.mrb[12].mxu0  ;;  %v719_v16 = vmax.f32 %v623_v10, 0.0 }
  0xfa   :  { %v468_v57 = vadd.f32 %v1130_v54, %v1446_v45  ;;  %v459_v60 = vpop.f32.mrb[13].mxu0  ;;  %v1498_v18 = vpack.c.bf16 %v721_v13, %v720_v5 }
  0xfb   :  { %v460_v63 = vadd.f32 %v1446_v45, %v459_v60  ;;  %v1131_v0 = vpop.f32.mrb[14].mxu0  ;;  %v1502_v25 = vpack.c.bf16 %v719_v16, %v718_v9  ;;  %v1174_v26 = vpop.f32.mrb[12].mxu1 }
  0xfc   :  { %v471_v3 = vadd.f32 %v1131_v0, %v1446_v45  ;;  %v462_v4 = vpop.f32.mrb[15].mxu0  ;;  %v680_v11 = vmax.f32 %v468_v57, 0.0  ;;  %v644_v29 = vadd.f32 %v1174_v26, %v1446_v45  ;;  %v635_v30 = vpop.f32.mrb[13].mxu1 }
  0xfd   :  { %v463_v8 = vadd.f32 %v1446_v45, %v462_v4  ;;  %v678_v14 = vmax.f32 %v460_v63, 0.0  ;;  %v636_v33 = vadd.f32 %v1446_v45, %v635_v30  ;;  %v1175_v34 = vpop.f32.mrb[14].mxu1 }
  0xfe   :  { %v681_v12 = vmax.f32 %v471_v3, 0.0  ;;  %v724_v37 = vmax.f32 %v644_v29, 0.0  ;;  %v647_v38 = vadd.f32 %v1175_v34, %v1446_v45  ;;  %v638_v39 = vpop.f32.mrb[15].mxu1 }
  0xff   :  { %v679_v15 = vmax.f32 %v463_v8, 0.0  ;;  %v722_v41 = vmax.f32 %v636_v33, 0.0  ;;  %v639_v42 = vadd.f32 %v1446_v45, %v638_v39 }
 0x100   :  { %v1496_v17 = vpack.c.bf16 %v681_v12, %v680_v11  ;;  %v725_v48 = vmax.f32 %v647_v38, 0.0 }
 0x101   :  { %v1500_v19 = vpack.c.bf16 %v679_v15, %v678_v14  ;;  %v1134_v23 = vpop.f32.mrb[16].mxu0  ;;  %v723_v54 = vmax.f32 %v639_v42, 0.0 }
 0x102   :  { %v484_v27 = vadd.f32 %v1134_v23, %v1446_v45  ;;  %v475_v28 = vpop.f32.mrb[17].mxu0  ;;  %v1512_v57 = vpack.c.bf16 %v725_v48, %v724_v37 }
 0x103   :  { %v476_v31 = vadd.f32 %v1446_v45, %v475_v28  ;;  %v1135_v32 = vpop.f32.mrb[18].mxu0  ;;  %v1514_v62 = vpack.c.bf16 %v723_v54, %v722_v41  ;;  %v1178_v63 = vpop.f32.mrb[16].mxu1 }
 0x104   :  { %v487_v35 = vadd.f32 %v1135_v32, %v1446_v45  ;;  %v478_v36 = vpop.f32.mrb[19].mxu0  ;;  %v684_v46 = vmax.f32 %v484_v27, 0.0  ;;  %v660_v2 = vadd.f32 %v1178_v63, %v1446_v45  ;;  %v651_v3 = vpop.f32.mrb[17].mxu1 }
 0x105   :  { %v479_v40 = vadd.f32 %v1446_v45, %v478_v36  ;;  %v682_v49 = vmax.f32 %v476_v31, 0.0  ;;  %v652_v6 = vadd.f32 %v1446_v45, %v651_v3  ;;  %v1179_v7 = vpop.f32.mrb[18].mxu1 }
 0x106   :  { %v685_v47 = vmax.f32 %v487_v35, 0.0  ;;  %v728_v10 = vmax.f32 %v660_v2, 0.0  ;;  %v663_v11 = vadd.f32 %v1179_v7, %v1446_v45  ;;  %v654_v12 = vpop.f32.mrb[19].mxu1 }
 0x107   :  { %v683_v50 = vmax.f32 %v479_v40, 0.0  ;;  %v726_v14 = vmax.f32 %v652_v6, 0.0  ;;  %v655_v15 = vadd.f32 %v1446_v45, %v654_v12 }
 0x108   :  { %v740_v56 = vpack.c.bf16 %v685_v47, %v684_v46  ;;  %v729_v26 = vmax.f32 %v663_v11, 0.0 }
 0x109   :  { %v739_v60 = vpack.c.bf16 %v683_v50, %v682_v49  ;;  %v1138_v61 = vpop.f32.mrb[20].mxu0  ;;  %v727_v29 = vmax.f32 %v655_v15, 0.0 }
 0x10a   :  { %v500_v0 = vadd.f32 %v1138_v61, %v1446_v45  ;;  %v491_v1 = vpop.f32.mrb[21].mxu0 }
 0x10b   :  { %v492_v4 = vadd.f32 %v1446_v45, %v491_v1  ;;  %v1139_v5 = vpop.f32.mrb[22].mxu0  ;;  %1063 = vmatprep.subr.bf16.mxu1 %v739_v60  ;;  %v1528_v33 = vpack.c.bf16 %v727_v29, %v726_v14 }
 0x10c   :  { %v503_v8 = vadd.f32 %v1139_v5, %v1446_v45  ;;  %v494_v9 = vpop.f32.mrb[23].mxu0  ;;  %1064 = vmatpush3.bf16.msra.mxu1 %v1454_v59  ;;  %v688_v16 = vmax.f32 %v500_v0, 0.0  ;;  %v1526_v59 = vpack.c.bf16 %v729_v26, %v728_v10 }
 0x10d   :  { %v495_v13 = vadd.f32 %v1446_v45, %v494_v9  ;;  %1065 = vmatprep.subr.bf16.mxu1 %v740_v56  ;;  %v686_v27 = vmax.f32 %v492_v4, 0.0 }
 0x10e   :  { %v689_v23 = vmax.f32 %v503_v8, 0.0 }
 0x10f   :  { %v687_v28 = vmax.f32 %v495_v13, 0.0 }
 0x110   :  { %v742_v30 = vpack.c.bf16 %v689_v23, %v688_v16  ;;  %1066 = vmatpush3.bf16.msra.mxu1 %v1452_v58  ;;  %v787_v16 = vcombine.high %v1438_v43, %v1438_v43 }
 0x111   :  { %v741_v31 = vpack.c.bf16 %v687_v28, %v686_v27  ;;  %v1142_v32 = vpop.f32.mrb[24].mxu0 }
 0x112   :  { %v516_v34 = vadd.f32 %v1142_v32, %v1446_v45  ;;  %v507_v35 = vpop.f32.mrb[25].mxu0 }
 0x113   :  { %v508_v36 = vadd.f32 %v1446_v45, %v507_v35  ;;  %v1143_v37 = vpop.f32.mrb[26].mxu0  ;;  %1067 = vmatprep.subr.bf16.mxu1 %v741_v31 }
 0x114   :  { %v519_v38 = vadd.f32 %v1143_v37, %v1446_v45  ;;  %v510_v39 = vpop.f32.mrb[27].mxu0  ;;  %1068 = vmatpush3.bf16.msra.mxu1 %v1468_v22  ;;  %v692_v40 = vmax.f32 %v516_v34, 0.0 }
 0x115   :  { %v511_v58 = vadd.f32 %v1446_v45, %v510_v39  ;;  %1069 = vmatprep.subr.bf16.mxu1 %v742_v30  ;;  %v690_v42 = vmax.f32 %v508_v36, 0.0 }
 0x116   :  { %v693_v41 = vmax.f32 %v519_v38, 0.0 }
 0x117   :  { %v691_v46 = vmax.f32 %v511_v58, 0.0 }
 0x118   :  { %v744_v47 = vpack.c.bf16 %v693_v41, %v692_v40  ;;  %1070 = vmatpush3.bf16.msra.mxu1 %v1464_v20 }
 0x119   :  { %v743_v48 = vpack.c.bf16 %v691_v46, %v690_v42  ;;  %v1146_v49 = vpop.f32.mrb[28].mxu0 }
 0x11a   :  { %v532_v50 = vadd.f32 %v1146_v49, %v1446_v45  ;;  %v523_v54 = vpop.f32.mrb[29].mxu0 }
 0x11b   :  { %v524_v56 = vadd.f32 %v1446_v45, %v523_v54  ;;  %v1147_v60 = vpop.f32.mrb[30].mxu0  ;;  %1071 = vmatprep.subr.bf16.mxu1 %v743_v48 }
 0x11c   :  { %v535_v22 = vadd.f32 %v1147_v60, %v1446_v45  ;;  %v526_v61 = vpop.f32.mrb[31].mxu0  ;;  %1072 = vmatpush3.bf16.msra.mxu1 %v1484_v53  ;;  %v696_v0 = vmax.f32 %v532_v50, 0.0 }
 0x11d   :  { %v527_v63 = vadd.f32 %v1446_v45, %v526_v61  ;;  %1073 = vmatprep.subr.bf16.mxu1 %v744_v47  ;;  %v694_v20 = vmax.f32 %v524_v56, 0.0 }
 0x11e   :  { %v697_v1 = vmax.f32 %v535_v22, 0.0 }
 0x11f   :  { %v695_v2 = vmax.f32 %v527_v63, 0.0 }
 0x120   :  { %v746_v3 = vpack.c.bf16 %v697_v1, %v696_v0  ;;  %1074 = vmatpush3.bf16.msra.mxu1 %v1480_v51  ;;  %v1024_v1 = vld [vmem:[%s1597_s5] ss:$0 sm:$0xff] }
 0x121   :  { %v745_v4 = vpack.c.bf16 %v695_v2, %v694_v20  ;;  %v1150_v5 = vpop.f32.mrb[32].mxu0 }
 0x122   :  { %v548_v6 = vadd.f32 %v1150_v5, %v1446_v45  ;;  %v539_v7 = vpop.f32.mrb[33].mxu0 }
 0x123   :  { %v540_v8 = vadd.f32 %v1446_v45, %v539_v7  ;;  %1075 = vmatprep.subr.bf16.mxu1 %v745_v4  ;;  %v1151_v9 = vpop.f32.mrb[34].mxu0 }
 0x124   :  { %v700_v53 = vmax.f32 %v548_v6, 0.0  ;;  %v551_v10 = vadd.f32 %v1151_v9, %v1446_v45  ;;  %1076 = vmatpush3.bf16.msra.mxu1 %v1500_v19  ;;  %v542_v11 = vpop.f32.mrb[35].mxu0 }
 0x125   :  { %v543_v12 = vadd.f32 %v1446_v45, %v542_v11  ;;  %1077 = vmatprep.subr.bf16.mxu1 %v746_v3  ;;  %v698_v51 = vmax.f32 %v540_v8, 0.0 }
 0x126   :  { %v701_v13 = vmax.f32 %v551_v10, 0.0 }
 0x127   :  { %v699_v14 = vmax.f32 %v543_v12, 0.0 }
 0x128   :  { %v748_v15 = vpack.c.bf16 %v701_v13, %v700_v53  ;;  %1078 = vmatpush3.bf16.msra.mxu1 %v1496_v17 }
 0x129   :  { %v747_v23 = vpack.c.bf16 %v699_v14, %v698_v51  ;;  %v1154_v26 = vpop.f32.mrb[36].mxu0  ;;  %1085 = vmatprep.subr.bf16.mxu1 %v1486_v55 }
 0x12a   :  { %v564_v27 = vadd.f32 %v1154_v26, %v1446_v45  ;;  %v555_v19 = vpop.f32.mrb[37].mxu0 }
 0x12b   :  { %v556_v28 = vadd.f32 %v1446_v45, %v555_v19  ;;  %v1155_v29 = vpop.f32.mrb[38].mxu0  ;;  %825 = vmatmul.mubr.bf16.vlgmr.msra.gmra.mrb[20].mxu1 %v1440_v44 }
 0x12c   :  { %v704_v30 = vmax.f32 %v564_v27, 0.0  ;;  %v567_v31 = vadd.f32 %v1155_v29, %v1446_v45  ;;  %1086 = vmatpush3.bf16.msra.mxu1 %v747_v23  ;;  %v558_v17 = vpop.f32.mrb[39].mxu0  ;;  %864 = vmatprep.mubr.bf16.mxu1 %v787_v16 }
 0x12d   :  { %v559_v43 = vadd.f32 %v1446_v45, %v558_v17  ;;  %1087 = vmatprep.subr.bf16.mxu1 %v1482_v52  ;;  %v702_v55 = vmax.f32 %v556_v28, 0.0 }
 0x12e   :  { %v705_v32 = vmax.f32 %v567_v31, 0.0 }
 0x12f   :  { %v703_v34 = vmax.f32 %v559_v43, 0.0 }
 0x130   :  { %v750_v35 = vpack.c.bf16 %v705_v32, %v704_v30  ;;  %1088 = vmatpush3.bf16.msra.mxu1 %v748_v15 }
 0x131   :  { %v749_v36 = vpack.c.bf16 %v703_v34, %v702_v55  ;;  %v1158_v37 = vpop.f32.mrb[40].mxu0  ;;  %1089 = vmatprep.subr.bf16.mxu1 %v1502_v25 }
 0x132   :  { %v580_v38 = vadd.f32 %v1158_v37, %v1446_v45  ;;  %v571_v39 = vpop.f32.mrb[41].mxu0 }
 0x133   :  { %v572_v58 = vadd.f32 %v1446_v45, %v571_v39  ;;  %v1159_v40 = vpop.f32.mrb[42].mxu0 }
 0x134   :  { %v708_v41 = vmax.f32 %v580_v38, 0.0  ;;  %v583_v42 = vadd.f32 %v1159_v40, %v1446_v45  ;;  %1090 = vmatpush3.bf16.msra.mxu1 %v749_v36  ;;  %v574_v52 = vpop.f32.mrb[43].mxu0 }
 0x135   :  { %v575_v46 = vadd.f32 %v1446_v45, %v574_v52  ;;  %1091 = vmatprep.subr.bf16.mxu1 %v1498_v18  ;;  %v706_v48 = vmax.f32 %v572_v58, 0.0  ;;  %v786_v45 = vcombine.high %v1440_v44, %v1440_v44  ;;  %v1233_v18 = vld [vmem:[%s1596_s4] sm:$0xff]  }
 0x136   :  { %v709_v47 = vmax.f32 %v583_v42, 0.0 }
 0x137   :  { %v707_v49 = vmax.f32 %v575_v46, 0.0 }
 0x138   :  { %v752_v50 = vpack.c.bf16 %v709_v47, %v708_v41  ;;  %1092 = vmatpush3.bf16.msra.mxu1 %v750_v35 }
 0x139   :  { %v751_v25 = vpack.c.bf16 %v707_v49, %v706_v48  ;;  %1093 = vmatprep.subr.bf16.mxu1 %v1514_v62  ;;  %v1260_v62 = vmov 0.0  }
 0x13c   :  { %1094 = vmatpush3.bf16.msra.mxu1 %v751_v25 }
 0x13d   :  { %1095 = vmatprep.subr.bf16.mxu1 %v1512_v57 }
 0x140   :  { %1096 = vmatpush3.bf16.msra.mxu1 %v752_v50 }
 0x141   :  { %1097 = vmatprep.subr.bf16.mxu1 %v1528_v33 }
 0x144   :  { %1098 = vmatpush3.bf16.msra.mxu1 %v1470_v24  ;;  %v1234_v24 = vld [vmem:[%s1596_s4 + $0x8] sm:$0xff]   ;;  %s1262_s4 = smov [#allocation2]  }
 0x145   :  { %1099 = vmatprep.subr.bf16.mxu1 %v1526_v59  ;;  %s947_s23 = sshll.u32 %s1262_s4, 4  ;;  %s948_s23 = int_to_ptr.vmem [resolvable:$true] %s947_s23 }
 0x146   :  { %s1235_s24 = scalar_lea.vmem %s948_s23, 32  ;;  %p1240_p1 = scmp.lt.s32.totalorder %s948_s23, %s948_s23 }
 0x147   :  { %p1236_p0 = scmp.ne.s32.totalorder %s948_s23, %s1235_s24  ;;  %p1241_p2 = scmp.lt.s32.totalorder %s1235_s24, %s1235_s24 }
 0x148   :  { %1100 = vmatpush3.bf16.msra.mxu1 %v1466_v21 }
 0x149   :  { %1180 = vmatprep.subr.bf16.mxu1 %v1260_v62  ;;  %p1242_p3 = por %p1241_p2, %p1240_p1 }
 0x14b   :  { %865 = vmatmul.mubr.bf16.vlgmr.msra.gmra.mrb[24].mxu1 %v786_v45  ;;  %p1243_p4 = pnand %p1242_p3, %p1236_p0 }
 0x14c   :  { %1181 = vmatpush3.bf16.msra.mxu1 %v1233_v18  ;;  %1184 = vmatprep.mubr.msk.bf16.mxu1 %vm1261_vm1, %v1260_v62 }
 0x14d   :  { %1182 = vmatprep.subr.bf16.mxu1 %v1260_v62 }
 0x150   :  { %1183 = vmatpush3.bf16.msra.mxu1 %v1234_v24 }
 0x1fe   :  { %v1079_v57 = vpop.f32.mrb[20].mxu1 }
 0x1ff   :  { %v1080_v44 = vpop.f32.mrb[21].mxu1 }
 0x200   :  { %v1081_v59 = vadd.f32 %v1080_v44, %v1079_v57  ;;  %v1082_v21 = vpop.f32.mrb[22].mxu1 }
 0x201   :  { %v1083_v33 = vpop.f32.mrb[23].mxu1 }
 0x21e   :  { %v1101_v54 = vpop.f32.mrb[24].mxu1 }
 0x21f   :  { %v1102_v56 = vpop.f32.mrb[25].mxu1 }
 0x220   :  { %v1103_v60 = vadd.f32 %v1102_v56, %v1101_v54  ;;  %v1104_v22 = vpop.f32.mrb[26].mxu1 }
 0x221   :  { %v1105_v61 = vpop.f32.mrb[27].mxu1 }
 0x222   :  { %v867_v63 = vadd.f32 %v1103_v60, %v1081_v59 }
 0x224   :  { %v872_v0 = vpack.c.bf16 %v867_v63, %v867_v63 }
 0x226   :  { %1185 = vmatmul.mubr.msk.bf16.vlgmr.msra.gmra.mrb[28].mxu1 %vm896_vm2, %v872_v0 }
 0x2f9   :  { %v934_v20 = vpop.f32.mrb[28].mxu1 }
 0x2fa   :  { %v935_v2 = vadd.f32 %v1024_v1, %v934_v20  ;;  %v1186_v3 = vpop.f32.mrb[29].mxu1 }
 0x2fb   :  { %v937_v4 = vpop.f32.mrb[30].mxu1 }
 0x2fc   :  { %940 = vst [vmem:[#allocation2] sm:$0x3] %v935_v2  ;;  %v1187_v5 = vpop.f32.mrb[31].mxu1 }
 0x2fd   :  { %1246 = shalt.err (!%p1243_p4)
}
 0x2fe   :  { %s1247_s5 = scalar_lea.hbm %s1598_s6, 32 }
 0x2ff   :  { %p1248_p5 = scmp.ne.s32.totalorder %s1598_s6, %s1247_s5  ;;  %p1251_p6 = scmp.lt.u32.totalorder %s1247_s5, %s1598_s6 }
 0x301   :  { %p1253_p7 = pnand %p1251_p6, %p1248_p5 }
 0x303   :  { %1256 = shalt.err (!%p1253_p7)
}
 0x304   :  { %950 = dma.vmem_to_hbm [thread:$0]  %s948_s23, 32, %s1598_s6, [#allocation3]  }
 0x305   :  { %1257 = dma.done.wait [#allocation3], 32  }
 0x306   :  { %1258 = vsyncadd [#allocation3], 4294967264 }
 0x307   :  { %954 = vsyncpa [#allocation3], 1 }

</bundles_post_ra>
